<compile_context>
chip_gen: v6e
topology: v6e:2x2x1
jax: 0.10.0
libtpu: 0.0.40
codegen_flags: <defaults>
</compile_context>

<pallas_src>
import jax
import jax.numpy as jnp
import numpy as np
from jax.experimental import pallas as pl
from jax.experimental.pallas import tpu as pltpu

S_MAX = 512  # sublane-tile cap: 512 sublanes * 128 lanes = 65536 triangles / block


def _cdiv(a, b):
    return -(-a // b)


def _round_up(x, m):
    return _cdiv(x, m) * m


def _num_tensorcores():
    """Best-effort TensorCores-per-chip (perf heuristic only, never correctness)."""
    try:
        kind = jax.devices()[0].device_kind.lower()
    except Exception:
        return 1
    return 2 if any(t in kind for t in ("v7", "v4", "v5p")) else 1


def _choose_grid(n):
    """Return (S, nblk): sublane tile (multiple of 8) and number of grid blocks."""
    nsub = _cdiv(max(n, 1), 128)          # number of 128-triangle lane groups
    ncores = _num_tensorcores()
    if nsub <= ncores * S_MAX:
        # Small/medium: one block per TensorCore; single block on 1-TC chips
        # so small inputs don't pay an extra ~0.35 us pipeline step.
        nblk = ncores if nsub >= ncores else 1
    else:
        # Large: split evenly (caps padding at <8*128 lanes/block) and keep the
        # block count a multiple of the core count so both TCs stay busy.
        nblk = _cdiv(nsub, S_MAX)
        if ncores > 1:
            nblk = _round_up(nblk, ncores)
    S = _round_up(_cdiv(nsub, nblk), 8)
    return S, nblk


def _normals_kernel(tri_ref, out_ref):
    # tri_ref: (9, S, 128)  plane = vertex*3 + coord, (sublane, lane) = triangle
    # out_ref: (3, S, 128)  plane = x / y / z of the unit normal
    v0x, v0y, v0z = tri_ref[0], tri_ref[1], tri_ref[2]
    v1x, v1y, v1z = tri_ref[3], tri_ref[4], tri_ref[5]
    v2x, v2y, v2z = tri_ref[6], tri_ref[7], tri_ref[8]

    # a = v2 - v0, b = v2 - v1   (full (S,128) vreg-dense slabs, pure VPU work)
    ax, ay, az = v2x - v0x, v2y - v0y, v2z - v0z
    bx, by, bz = v2x - v1x, v2y - v1y, v2z - v1z

    # normal = cross(a, b)
    nx = ay * bz - az * by
    ny = az * bx - ax * bz
    nz = ax * by - ay * bx

    # One full-precision rsqrt (EUP slot) instead of sqrt + 3 divides.
    inv = jax.lax.rsqrt(nx * nx + ny * ny + nz * nz)

    # Direct per-plane stores: no concatenate / sublane-packing copies.
    out_ref[0] = (nx * inv).astype(out_ref.dtype)
    out_ref[1] = (ny * inv).astype(out_ref.dtype)
    out_ref[2] = (nz * inv).astype(out_ref.dtype)


@jax.jit
def get_normals(triangles):
    """triangles: (N, 3, 3) float -> (N, 3) unit face normals (GetNormals.forward)."""
    N = triangles.shape[0]
    dtype = triangles.dtype
    S, nblk = _choose_grid(N)
    nsub_pad = S * nblk
    n_pad = nsub_pad * 128

    # AoS (N,3,3) -> SoA (9, N): plane = vertex*3 + coord, column = triangle.
    tri_t = jnp.transpose(triangles, (1, 2, 0)).reshape(9, N)
    if n_pad != N:
        # Pad with a non-degenerate triangle (v0=0, v1=ex, v2=ey) so padded
        # lanes yield a finite normal instead of rsqrt(0)=inf -> NaN.
        pad_col = jnp.array([0, 0, 0, 1, 0, 0, 0, 1, 0], dtype=dtype).reshape(9, 1)
        tri_t = jnp.concatenate(
            [tri_t, jnp.broadcast_to(pad_col, (9, n_pad - N))], axis=1)

    # Fold triangles into (sublane, lane): full (8,128) vregs, no sublane padding.
    tri_t = tri_t.reshape(9, nsub_pad, 128)

    out_t = pl.pallas_call(
        _normals_kernel,
        out_shape=jax.ShapeDtypeStruct((3, nsub_pad, 128), dtype),
        grid_spec=pltpu.PrefetchScalarGridSpec(
            num_scalar_prefetch=0,
            grid=(nblk,),
            in_specs=[pl.BlockSpec((9, S, 128), lambda i: (0, i, 0))],
            out_specs=pl.BlockSpec((3, S, 128), lambda i: (0, i, 0)),
        ),
        compiler_params=pltpu.CompilerParams(
            dimension_semantics=("parallel",),
            allow_input_fusion=[True],  # fold the transpose/pad into the input DMA
        ),
    )(tri_t)

    # (3, nsub_pad, 128) -> (3, N) -> (N, 3)
    return jnp.transpose(out_t.reshape(3, n_pad)[:, :N], (1, 0))


def _reference(triangles):
    v2_v1 = triangles[:, 2, :] - triangles[:, 1, :]
    v2_v0 = triangles[:, 2, :] - triangles[:, 0, :]
    normal = jnp.cross(v2_v0, v2_v1)
    z = jnp.linalg.norm(normal, axis=1, keepdims=True)
    return normal / z


if __name__ == "__main__":
    key = jax.random.PRNGKey(0)

    # multiple-of-128 case
    N = 256
    triangles = jax.random.normal(key, (N, 3, 3), dtype=jnp.float32)
    out = jax.block_until_ready(get_normals(triangles))
    ref = _reference(triangles)
    assert out.shape == (N, 3)
    np.testing.assert_allclose(np.asarray(out), np.asarray(ref),
                               rtol=1e-5, atol=1e-5)

    # non-multiple-of-128 case exercises the padding path
    N2 = 200
    tri2 = jax.random.normal(jax.random.PRNGKey(1), (N2, 3, 3), dtype=jnp.float32)
    out2 = jax.block_until_ready(get_normals(tri2))
    ref2 = _reference(tri2)
    assert out2.shape == (N2, 3)
    np.testing.assert_allclose(np.asarray(out2), np.asarray(ref2),
                               rtol=1e-5, atol=1e-5)

    print("KERNEL_OK")
</pallas_src>

<mosaic_0001>
module attributes {stable_mosaic.version = 11 : i64} {
  func.func @_normals_kernel(%arg0: i32, %arg1: memref<9x8x128xf32, #tpu.memory_space<vmem>>, %arg2: memref<3x8x128xf32, #tpu.memory_space<vmem>>) attributes {dimension_semantics = [#tpu.dimension_semantics<parallel>], iteration_bounds = array<i64: 1>, scalar_prefetch = 0 : i64, scratch_operands = 0 : i64, tpu.core_type = #tpu.core_type<tc>, window_params = [{transform_indices = @transform_0, window_bounds = array<i64: 9, 8, 128>}, {transform_indices = @transform_1, window_bounds = array<i64: 3, 8, 128>}]} {
    %c0 = arith.constant 0 : index
    %c0_0 = arith.constant 0 : index
    %c0_1 = arith.constant 0 : index
    %0 = vector.load %arg1[%c0, %c0_0, %c0_1] : memref<9x8x128xf32, #tpu.memory_space<vmem>>, vector<1x8x128xf32>
    %1 = vector.shape_cast %0 : vector<1x8x128xf32> to vector<8x128xf32>
    %c1 = arith.constant 1 : index
    %c0_2 = arith.constant 0 : index
    %c0_3 = arith.constant 0 : index
    %2 = vector.load %arg1[%c1, %c0_2, %c0_3] : memref<9x8x128xf32, #tpu.memory_space<vmem>>, vector<1x8x128xf32>
    %3 = vector.shape_cast %2 : vector<1x8x128xf32> to vector<8x128xf32>
    %c2 = arith.constant 2 : index
    %c0_4 = arith.constant 0 : index
    %c0_5 = arith.constant 0 : index
    %4 = vector.load %arg1[%c2, %c0_4, %c0_5] : memref<9x8x128xf32, #tpu.memory_space<vmem>>, vector<1x8x128xf32>
    %5 = vector.shape_cast %4 : vector<1x8x128xf32> to vector<8x128xf32>
    %c3 = arith.constant 3 : index
    %c0_6 = arith.constant 0 : index
    %c0_7 = arith.constant 0 : index
    %6 = vector.load %arg1[%c3, %c0_6, %c0_7] : memref<9x8x128xf32, #tpu.memory_space<vmem>>, vector<1x8x128xf32>
    %7 = vector.shape_cast %6 : vector<1x8x128xf32> to vector<8x128xf32>
    %c4 = arith.constant 4 : index
    %c0_8 = arith.constant 0 : index
    %c0_9 = arith.constant 0 : index
    %8 = vector.load %arg1[%c4, %c0_8, %c0_9] : memref<9x8x128xf32, #tpu.memory_space<vmem>>, vector<1x8x128xf32>
    %9 = vector.shape_cast %8 : vector<1x8x128xf32> to vector<8x128xf32>
    %c5 = arith.constant 5 : index
    %c0_10 = arith.constant 0 : index
    %c0_11 = arith.constant 0 : index
    %10 = vector.load %arg1[%c5, %c0_10, %c0_11] : memref<9x8x128xf32, #tpu.memory_space<vmem>>, vector<1x8x128xf32>
    %11 = vector.shape_cast %10 : vector<1x8x128xf32> to vector<8x128xf32>
    %c6 = arith.constant 6 : index
    %c0_12 = arith.constant 0 : index
    %c0_13 = arith.constant 0 : index
    %12 = vector.load %arg1[%c6, %c0_12, %c0_13] : memref<9x8x128xf32, #tpu.memory_space<vmem>>, vector<1x8x128xf32>
    %13 = vector.shape_cast %12 : vector<1x8x128xf32> to vector<8x128xf32>
    %c7 = arith.constant 7 : index
    %c0_14 = arith.constant 0 : index
    %c0_15 = arith.constant 0 : index
    %14 = vector.load %arg1[%c7, %c0_14, %c0_15] : memref<9x8x128xf32, #tpu.memory_space<vmem>>, vector<1x8x128xf32>
    %15 = vector.shape_cast %14 : vector<1x8x128xf32> to vector<8x128xf32>
    %c8 = arith.constant 8 : index
    %c0_16 = arith.constant 0 : index
    %c0_17 = arith.constant 0 : index
    %16 = vector.load %arg1[%c8, %c0_16, %c0_17] : memref<9x8x128xf32, #tpu.memory_space<vmem>>, vector<1x8x128xf32>
    %17 = vector.shape_cast %16 : vector<1x8x128xf32> to vector<8x128xf32>
    %18 = arith.subf %13, %1 : vector<8x128xf32>
    %19 = arith.subf %15, %3 : vector<8x128xf32>
    %20 = arith.subf %17, %5 : vector<8x128xf32>
    %21 = arith.subf %13, %7 : vector<8x128xf32>
    %22 = arith.subf %15, %9 : vector<8x128xf32>
    %23 = arith.subf %17, %11 : vector<8x128xf32>
    %24 = arith.mulf %19, %23 : vector<8x128xf32>
    %25 = arith.mulf %20, %22 : vector<8x128xf32>
    %26 = arith.subf %24, %25 : vector<8x128xf32>
    %27 = arith.mulf %20, %21 : vector<8x128xf32>
    %28 = arith.mulf %18, %23 : vector<8x128xf32>
    %29 = arith.subf %27, %28 : vector<8x128xf32>
    %30 = arith.mulf %18, %22 : vector<8x128xf32>
    %31 = arith.mulf %19, %21 : vector<8x128xf32>
    %32 = arith.subf %30, %31 : vector<8x128xf32>
    %33 = arith.mulf %26, %26 : vector<8x128xf32>
    %34 = arith.mulf %29, %29 : vector<8x128xf32>
    %35 = arith.addf %33, %34 : vector<8x128xf32>
    %36 = arith.mulf %32, %32 : vector<8x128xf32>
    %37 = arith.addf %35, %36 : vector<8x128xf32>
    %38 = math.rsqrt %37 : vector<8x128xf32>
    %39 = arith.mulf %26, %38 : vector<8x128xf32>
    %c0_18 = arith.constant 0 : index
    %c0_19 = arith.constant 0 : index
    %c0_20 = arith.constant 0 : index
    %40 = vector.load %arg2[%c0_18, %c0_19, %c0_20] : memref<3x8x128xf32, #tpu.memory_space<vmem>>, vector<1x8x128xf32>
    %41 = vector.shape_cast %40 : vector<1x8x128xf32> to vector<8x128xf32>
    %42 = vector.shape_cast %39 : vector<8x128xf32> to vector<1x8x128xf32>
    tpu.vector_store %arg2[%c0_18, %c0_19, %c0_20], %42 {strides = array<i32>} : memref<3x8x128xf32, #tpu.memory_space<vmem>>, vector<1x8x128xf32>,
    %43 = arith.mulf %29, %38 : vector<8x128xf32>
    %c1_21 = arith.constant 1 : index
    %c0_22 = arith.constant 0 : index
    %c0_23 = arith.constant 0 : index
    %44 = vector.load %arg2[%c1_21, %c0_22, %c0_23] : memref<3x8x128xf32, #tpu.memory_space<vmem>>, vector<1x8x128xf32>
    %45 = vector.shape_cast %44 : vector<1x8x128xf32> to vector<8x128xf32>
    %46 = vector.shape_cast %43 : vector<8x128xf32> to vector<1x8x128xf32>
    tpu.vector_store %arg2[%c1_21, %c0_22, %c0_23], %46 {strides = array<i32>} : memref<3x8x128xf32, #tpu.memory_space<vmem>>, vector<1x8x128xf32>,
    %47 = arith.mulf %32, %38 : vector<8x128xf32>
    %c2_24 = arith.constant 2 : index
    %c0_25 = arith.constant 0 : index
    %c0_26 = arith.constant 0 : index
    %48 = vector.load %arg2[%c2_24, %c0_25, %c0_26] : memref<3x8x128xf32, #tpu.memory_space<vmem>>, vector<1x8x128xf32>
    %49 = vector.shape_cast %48 : vector<1x8x128xf32> to vector<8x128xf32>
    %50 = vector.shape_cast %47 : vector<8x128xf32> to vector<1x8x128xf32>
    tpu.vector_store %arg2[%c2_24, %c0_25, %c0_26], %50 {strides = array<i32>} : memref<3x8x128xf32, #tpu.memory_space<vmem>>, vector<1x8x128xf32>,
    return
  }
  func.func @transform_0(%arg0: i32) -> (i32, i32, i32) {
    %c0_i32 = arith.constant 0 : i32
    %c0_i32_0 = arith.constant 0 : i32
    %c0_i32_1 = arith.constant 0 : i32
    return %c0_i32, %arg0, %c0_i32_0 : i32, i32, i32
  }
  func.func @transform_1(%arg0: i32) -> (i32, i32, i32) {
    %c0_i32 = arith.constant 0 : i32
    %c0_i32_0 = arith.constant 0 : i32
    %c0_i32_1 = arith.constant 0 : i32
    return %c0_i32, %arg0, %c0_i32_0 : i32, i32, i32
  }
}

</mosaic_0001>

<bundles_post_ra>
// kernel: get_normals.2
= control target key start
LH: loop header
LB: loop body
LE: loop exit
PB: predicated region body
PF: predicated region fallthrough
CT: control target
= control target key end

     0   :  { %s168_s0 = inlined_call_operand.vmem [shape: f32[16,8,128], index: 0, kind: input, shape index: {}]   ;;  %s169_s1 = inlined_call_operand.vmem [shape: f32[3,8,128], index: 1, kind: output, shape index: {}]  }
   0x1   :  { %v8_v0 = vld [vmem:[%s168_s0] sm:$0xff]  ;;  %v110_v1 = vld [vmem:[%s168_s0 + $0x8] sm:$0xff]  ;;  %v111_v2 = vld [vmem:[%s168_s0 + $0x10] sm:$0xff] }
   0x2   :  { %v112_v3 = vld [vmem:[%s168_s0 + $0x18] sm:$0xff]  ;;  %v113_v4 = vld [vmem:[%s168_s0 + $0x20] sm:$0xff]  ;;  %v114_v5 = vld [vmem:[%s168_s0 + $0x28] sm:$0xff] }
   0x3   :  { %v115_v6 = vld [vmem:[%s168_s0 + $0x30] sm:$0xff]  ;;  %v116_v7 = vld [vmem:[%s168_s0 + $0x38] sm:$0xff]  ;;  %v117_v8 = vld [vmem:[%s168_s0 + $0x40] sm:$0xff] }
   0x4   :  { %v77_v9 = vsub.f32 %v115_v6, %v8_v0  ;;  %v78_v10 = vsub.f32 %v116_v7, %v110_v1  ;;  %v79_v11 = vsub.f32 %v117_v8, %v111_v2  ;;  %v80_v12 = vsub.f32 %v115_v6, %v112_v3 }
   0x5   :  { %v81_v13 = vsub.f32 %v116_v7, %v113_v4  ;;  %v82_v14 = vsub.f32 %v117_v8, %v114_v5 }
   0x6   :  { %v86_v15 = vmul.f32 %v80_v12, %v79_v11  ;;  %v90_v16 = vmul.f32 %v80_v12, %v78_v10 }
   0x7   :  { %v83_v17 = vmul.f32 %v82_v14, %v78_v10  ;;  %v84_v18 = vmul.f32 %v81_v13, %v79_v11  ;;  %v87_v19 = vmul.f32 %v82_v14, %v77_v9  ;;  %v89_v20 = vmul.f32 %v81_v13, %v77_v9 }
   0x9   :  { %v85_v21 = vsub.f32 %v83_v17, %v84_v18  ;;  %v88_v22 = vsub.f32 %v86_v15, %v87_v19  ;;  %v91_v23 = vsub.f32 %v89_v20, %v90_v16 }
   0xb   :  { %v92_v24 = vmul.f32 %v85_v21, %v85_v21  ;;  %v93_v25 = vmul.f32 %v88_v22, %v88_v22  ;;  %v95_v26 = vmul.f32 %v91_v23, %v91_v23 }
   0xd   :  { %v94_v27 = vadd.f32 %v93_v25, %v92_v24 }
   0xf   :  { %v96_v28 = vadd.f32 %v95_v26, %v94_v27 }
  0x11   :  { %120 = vrsqrt.f32 %v96_v28 }
  0x1e   :  { %v121_v29 = vpop.eup %120 }
  0x1f   :  { %v98_v30 = vmul.f32 %v121_v29, %v85_v21  ;;  %v100_v31 = vmul.f32 %v121_v29, %v88_v22  ;;  %v103_v32 = vmul.f32 %v121_v29, %v91_v23 }
  0x21   :  { %99 = vst [vmem:[%s169_s1] sm:$0xff] %v98_v30  ;;  %118 = vst [vmem:[%s169_s1 + $0x8] sm:$0xff] %v100_v31 }
  0x22   :  { %119 = vst [vmem:[%s169_s1 + $0x10] sm:$0xff] %v103_v32 }

</bundles_post_ra>
